<compile_context>
chip_gen: v7x
topology: tpu7x:2x2x1
jax: 0.10.0
libtpu: 0.0.40
codegen_flags: <defaults>
</compile_context>

<pallas_src>
import functools
import math

import jax
import jax.numpy as jnp
import numpy as np
from jax import lax
from jax.experimental import pallas as pl
from jax.experimental.pallas import tpu as pltpu

_LANE = 128


def _mha_kernel(x_ref, w_ref, o_ref, *, pk, pv, inv_sqrt_dk, masked):
    x = x_ref[...]          # (T, E)
    w = w_ref[...]          # (E, 2*pk + pv)  fused, lane-padded [Q | K | V]

    # Single fused projection matmul on the MXU (one pass over x).
    qkv = jnp.dot(x, w, preferred_element_type=jnp.float32)   # (T, 2*pk+pv)

    # Lane-aligned slices (pk, pv are multiples of 128 -> vreg-granular, free).
    # Fold the 1/sqrt(d_key) scale into q (T*pk elems, not T*T).
    q = qkv[:, :pk] * inv_sqrt_dk          # (T, pk)  padded cols are zero
    k = qkv[:, pk:2 * pk]                  # (T, pk)
    v = qkv[:, 2 * pk:]                    # (T, pv)

    # Scores: contract on the last dim of both operands -> no explicit k.T.
    # Zero-padded key columns contribute nothing to the contraction.
    s = lax.dot_general(q, k, (((1,), (1,)), ((), ())),
                        preferred_element_type=jnp.float32)   # (T, T)

    if masked:
        t = s.shape[0]
        row = lax.broadcasted_iota(jnp.int32, (t, t), 0)
        col = lax.broadcasted_iota(jnp.int32, (t, t), 1)
        # torch.triu(ones, diagonal=0): upper triangle INCLUDING the diagonal
        # is masked to -inf (row 0 -> all -inf -> NaN after softmax, exactly
        # like the PyTorch module).
        s = jnp.where(col >= row, -jnp.inf, s)

    # Online-style softmax pieces; normalization deferred past the PV matmul.
    m = jnp.max(s, axis=-1, keepdims=True)
    e = jnp.exp(s - m)
    l = jnp.sum(e, axis=-1, keepdims=True)                    # (T, 1)

    o = jnp.dot(e, v, preferred_element_type=jnp.float32)     # (T, pv) unnormalized
    # One reciprocal per row + (T, pv) multiply instead of a (T, T) divide.
    o_ref[...] = (o * pl.reciprocal(l)).astype(o_ref.dtype)


def _round_up(n, m):
    return ((n + m - 1) // m) * m


def _pad_last(w, p):
    d = p - w.shape[-1]
    return jnp.pad(w, ((0, 0), (0, 0), (0, d))) if d else w


def multi_head_attention(x, q_proj, k_proj, v_proj, *, masked=True):
    B, T, E = x.shape
    H, E2, Dk = q_proj.shape
    _, _, Dv = v_proj.shape
    assert B == H and E == E2, "torch.bmm semantics require batch == num_heads"

    # Fused, lane-padded weight: (B, E, 2*pk + pv) with 128-aligned Q/K/V blocks.
    pk = _round_up(Dk, _LANE)
    pv = _round_up(Dv, _LANE)
    w_fused = jnp.concatenate(
        [_pad_last(q_proj, pk), _pad_last(k_proj, pk), _pad_last(v_proj, pv)],
        axis=-1)
    n_fused = 2 * pk + pv

    kernel = functools.partial(
        _mha_kernel, pk=pk, pv=pv,
        inv_sqrt_dk=1.0 / math.sqrt(Dk), masked=masked)

    out_padded = pl.pallas_call(
        kernel,
        out_shape=jax.ShapeDtypeStruct((B, T, pv), x.dtype),
        grid_spec=pltpu.PrefetchScalarGridSpec(
            num_scalar_prefetch=0,
            grid=(B,),
            in_specs=[
                # Leading head dim squeezed -> kernel refs are 2D.
                pl.BlockSpec((None, T, E), lambda b: (b, 0, 0)),
                pl.BlockSpec((None, E, n_fused), lambda b: (b, 0, 0)),
            ],
            out_specs=pl.BlockSpec((None, T, pv), lambda b: (b, 0, 0)),
        ),
        compiler_params=pltpu.CompilerParams(
            # Head axis is independent -> shards across v7x's 2 TensorCores.
            dimension_semantics=("parallel",),
            # Explicit scoped-VMEM budget; safe headroom on v5e/v6e/v7x.
            vmem_limit_bytes=32 * 1024 * 1024,
        ),
    )(x, w_fused)

    # Drop the lane padding (store was lane-dense; the real Dv is sliced here).
    return out_padded[..., :Dv]


def _reference(x, q_proj, k_proj, v_proj, masked=True):
    q = jnp.einsum("bte,bek->btk", x, q_proj)
    k = jnp.einsum("bte,bek->btk", x, k_proj)
    v = jnp.einsum("bte,bev->btv", x, v_proj)
    s = jnp.einsum("btk,bsk->bts", q, k) / math.sqrt(q_proj.shape[-1])
    if masked:
        t = s.shape[-1]
        mask = jnp.triu(jnp.ones((t, t), dtype=bool), k=0)
        s = jnp.where(mask[None], -jnp.inf, s)
    m = jnp.max(s, axis=-1, keepdims=True)
    e = jnp.exp(s - m)
    w = e / jnp.sum(e, axis=-1, keepdims=True)
    return jnp.einsum("bts,bsv->btv", w, v)


if __name__ == "__main__":
    # Small shapes consistent with the module: batch == num_heads == 2,
    # context = 8, embedding = 32, d_key = d_value = 16.
    B = H = 2
    T, E, DK, DV = 8, 32, 16, 16

    key = jax.random.PRNGKey(0)
    kx, kq, kk, kv = jax.random.split(key, 4)
    x = jax.random.normal(kx, (B, T, E), dtype=jnp.float32)
    q_proj = jax.random.normal(kq, (H, E, DK), dtype=jnp.float32)
    k_proj = jax.random.normal(kk, (H, E, DK), dtype=jnp.float32)
    v_proj = jax.random.normal(kv, (H, E, DV), dtype=jnp.float32)

    out = multi_head_attention(x, q_proj, k_proj, v_proj, masked=True)
    out = jax.block_until_ready(out)

    ref = _reference(x, q_proj, k_proj, v_proj, masked=True)
    # Row 0 is NaN by construction (full -inf mask row), exactly like PyTorch;
    # compare with equal_nan so those positions match too.
    np.testing.assert_allclose(np.asarray(out), np.asarray(ref),
                               rtol=1e-5, atol=1e-5, equal_nan=True)
    print("KERNEL_OK")
</pallas_src>

<mosaic_0001>
module attributes {stable_mosaic.version = 11 : i64} {
  func.func @_mha_kernel(%arg0: i32, %arg1: memref<1x8x32xf32, #tpu.memory_space<vmem>>, %arg2: memref<1x32x384xf32, #tpu.memory_space<vmem>>, %arg3: memref<1x8x128xf32, #tpu.memory_space<vmem>>) attributes {dimension_semantics = [#tpu.dimension_semantics<parallel>], iteration_bounds = array<i64: 2>, scalar_prefetch = 0 : i64, scratch_operands = 0 : i64, tpu.core_type = #tpu.core_type<tc>, window_params = [{transform_indices = @transform_0, window_bounds = array<i64: 1, 8, 32>}, {transform_indices = @transform_1, window_bounds = array<i64: 1, 32, 384>}, {transform_indices = @transform_2, window_bounds = array<i64: 1, 8, 128>}]} {
    %c0 = arith.constant 0 : index
    %c0_0 = arith.constant 0 : index
    %c0_1 = arith.constant 0 : index
    %0 = vector.load %arg1[%c0, %c0_0, %c0_1] : memref<1x8x32xf32, #tpu.memory_space<vmem>>, vector<1x8x32xf32>
    %1 = vector.shape_cast %0 : vector<1x8x32xf32> to vector<8x32xf32>
    %c0_2 = arith.constant 0 : index
    %c0_3 = arith.constant 0 : index
    %c0_4 = arith.constant 0 : index
    %2 = vector.load %arg2[%c0_2, %c0_3, %c0_4] : memref<1x32x384xf32, #tpu.memory_space<vmem>>, vector<1x32x384xf32>
    %3 = vector.shape_cast %2 : vector<1x32x384xf32> to vector<32x384xf32>
    %cst = arith.constant dense<0.000000e+00> : vector<8x384xf32>
    %4 = tpu.matmul %1, %3, %cst {dimension_numbers = #tpu.dot_dimension_numbers<[1], [0], [0], [1], [0, 0, 1, 1], [], []>} : vector<8x32xf32>, vector<32x384xf32>, vector<8x384xf32> -> vector<8x384xf32>
    %5 = vector.extract_strided_slice %4 {offsets = [0, 0], sizes = [8, 128], strides = [1, 1]} : vector<8x384xf32> to vector<8x128xf32>
    %cst_5 = arith.constant 2.500000e-01 : f32
    %6 = vector.broadcast %cst_5 : f32 to vector<8x128xf32>
    %7 = arith.mulf %5, %6 : vector<8x128xf32>
    %8 = vector.extract_strided_slice %4 {offsets = [0, 128], sizes = [8, 128], strides = [1, 1]} : vector<8x384xf32> to vector<8x128xf32>
    %9 = vector.extract_strided_slice %4 {offsets = [0, 256], sizes = [8, 128], strides = [1, 1]} : vector<8x384xf32> to vector<8x128xf32>
    %cst_6 = arith.constant dense<0.000000e+00> : vector<8x8xf32>
    %10 = tpu.matmul %7, %8, %cst_6 {dimension_numbers = #tpu.dot_dimension_numbers<[1], [1], [0], [0], [0, 0, 1, 0], [], []>} : vector<8x128xf32>, vector<8x128xf32>, vector<8x8xf32> -> vector<8x8xf32>
    %11 = tpu.iota {dimensions = array<i32: 0>} : vector<8x8xi32>
    %12 = tpu.iota {dimensions = array<i32: 1>} : vector<8x8xi32>
    %13 = arith.cmpi sge, %12, %11 : vector<8x8xi32>
    %cst_7 = arith.constant 0xFF800000 : f32
    %14 = vector.broadcast %cst_7 : f32 to vector<8x8xf32>
    %15 = arith.select %13, %14, %10 : vector<8x8xi1>, vector<8x8xf32>
    %cst_8 = arith.constant dense<0xFF800000> : vector<8xf32>
    %16 = vector.multi_reduction <maximumf>, %15, %cst_8 [1] : vector<8x8xf32> to vector<8xf32>
    %17 = vector.shape_cast %16 : vector<8xf32> to vector<8x1xf32>
    %18 = vector.broadcast %17 : vector<8x1xf32> to vector<8x8xf32>
    %19 = arith.subf %15, %18 : vector<8x8xf32>
    %20 = math.exp %19 : vector<8x8xf32>
    %cst_9 = arith.constant dense<0.000000e+00> : vector<8xf32>
    %21 = vector.multi_reduction <add>, %20, %cst_9 [1] : vector<8x8xf32> to vector<8xf32>
    %22 = vector.shape_cast %21 : vector<8xf32> to vector<8x1xf32>
    %cst_10 = arith.constant dense<0.000000e+00> : vector<8x128xf32>
    %23 = tpu.matmul %20, %9, %cst_10 {dimension_numbers = #tpu.dot_dimension_numbers<[1], [0], [0], [1], [0, 0, 1, 1], [], []>} : vector<8x8xf32>, vector<8x128xf32>, vector<8x128xf32> -> vector<8x128xf32>
    %24 = tpu.reciprocal %22 : vector<8x1xf32> -> vector<8x1xf32>
    %25 = vector.broadcast %24 : vector<8x1xf32> to vector<8x128xf32>
    %26 = arith.mulf %23, %25 : vector<8x128xf32>
    %c0_11 = arith.constant 0 : index
    %c0_12 = arith.constant 0 : index
    %c0_13 = arith.constant 0 : index
    %27 = vector.load %arg3[%c0_11, %c0_12, %c0_13] : memref<1x8x128xf32, #tpu.memory_space<vmem>>, vector<1x8x128xf32>
    %28 = vector.shape_cast %27 : vector<1x8x128xf32> to vector<8x128xf32>
    %29 = vector.shape_cast %26 : vector<8x128xf32> to vector<1x8x128xf32>
    tpu.vector_store %arg3[%c0_11, %c0_12, %c0_13], %29 {strides = array<i32>} : memref<1x8x128xf32, #tpu.memory_space<vmem>>, vector<1x8x128xf32>,
    return
  }
  func.func @transform_0(%arg0: i32) -> (i32, i32, i32) {
    %c0_i32 = arith.constant 0 : i32
    %c0_i32_0 = arith.constant 0 : i32
    %c0_i32_1 = arith.constant 0 : i32
    return %arg0, %c0_i32, %c0_i32_0 : i32, i32, i32
  }
  func.func @transform_1(%arg0: i32) -> (i32, i32, i32) {
    %c0_i32 = arith.constant 0 : i32
    %c0_i32_0 = arith.constant 0 : i32
    %c0_i32_1 = arith.constant 0 : i32
    return %arg0, %c0_i32, %c0_i32_0 : i32, i32, i32
  }
  func.func @transform_2(%arg0: i32) -> (i32, i32, i32) {
    %c0_i32 = arith.constant 0 : i32
    %c0_i32_0 = arith.constant 0 : i32
    %c0_i32_1 = arith.constant 0 : i32
    return %arg0, %c0_i32, %c0_i32_0 : i32, i32, i32
  }
}

</mosaic_0001>

<bundles_post_ra>
// kernel: tpu_custom_call.1
= control target key start
LH: loop header
LB: loop body
LE: loop exit
PB: predicated region body
PF: predicated region fallthrough
CT: control target
= control target key end

     0   :  { %7 = vsyncpa [#allocation3], 0  ;;  %s1140_s0 = inlined_call_operand.hbm [shape: f32[2,8,32], index: 0, kind: input, shape index: {}]   ;;  %s1141_s1 = inlined_call_operand.hbm [shape: f32[2,32,384], index: 1, kind: input, shape index: {}]   ;;  %s1142_s2 = inlined_call_operand.hbm [shape: f32[2,8,128], index: 2, kind: output, shape index: {}]  }
   0x1   :  { %9 = vsyncpa [#allocation3 + $0x1], 0 }
   0x2   :  { %10 = vsyncpa [#allocation6], 0 }
   0x3   :  { %12 = vsyncpa [#allocation6 + $0x1], 0 }
   0x4   :  { %13 = vsyncpa [#allocation4], 0 }
   0x5   :  { %15 = vsyncpa [#allocation4 + $0x1], 0  ;;  %s905_s9 = smov 0   ;;  %s907_s10 = smov 0  }
   0x6   :  { %s909_s11 = smov 0   ;;  %s911_s12 = smov 0  }
   0x7 LB: > { %s926_s13 = sadd.s32 4294967295, %s880_s12   ;;  %s627_s14 = sadd.s32 4294967294, %s880_s12   ;;  %s880_s12 = sphi %s911_s12, %s1160_s12   ;;  %s876_s11 = sphi %s909_s11, %s1159_s11   ;;  %s872_s10 = sphi %s907_s10, %s1158_s10   ;;  %s868_s9 = sphi %s905_s9, %s1157_s9  }
   0x8   : > { %s930_s15 = sadd.s32 1, %s880_s12   ;;  %s28_s16 = sadd.s32 1, %s876_s11 }
   0x9   : > { %s25_s17 = ssub.s32 %s880_s12, %s930_s15  ;;  %p35_p0 = scmp.ne.s32.totalorder %s876_s11, %s872_s10 }
   0xa   : > { %p26_p1 = scmp.eq.s32.totalorder %s25_s17, 0  ;;  %p36_p2 = scmp.eq.s32.totalorder %s880_s12, 0 }
   0xb   : > { %p41_p3 = scmp.ne.s32.totalorder %s872_s10, %s868_s9  ;;  %p42_p4 = scmp.eq.s32.totalorder %s926_s13, 0 }
   0xc   : > { %s942_s18 = scalar_select %p26_p1, %s876_s11, %s28_s16  }
   0xd   : > { %p944_p5 = por %p36_p2, %p35_p0  ;;  %p948_p6 = por %p42_p4, %p41_p3 }
   0xe   : > { %p91_p7 = scmp.eq.s32.totalorder %s926_s13, 1  ;;  %p97_p8 = scmp.eq.s32.totalorder %s627_s14, 1 }
   0xf   : > { %s1146_s20 = scalar_select %p948_p6, 1, 0 }
  0x10   : > { %p707_p10 = scmp.lt.s32.totalorder %s880_s12, 2  ;;  %p955_p11 = por %p91_p7, %p35_p0 }
  0x11   : > { %p959_p12 = por %p97_p8, %p41_p3  ;;  %s964_s23 = sand.u32 1, %s876_s11  }
  0x12   : > { %s1147_s21 = scalar_select %p955_p11, 1, 0 }
  0x13   : > { %s1148_s22 = scalar_select %p959_p12, 1, 0 }
  0x14   : > { %s631_s24 = sshll.u32 %s880_s12, 7  ;;  %s630_s25 = sshll.u32 %s964_s23, 3 }
  0x15   : > { %s971_s28 = scalar_lea.hbm %s1140_s0, %s631_s24  ;;  %s121_s29 = scalar_lea.vmem [#allocation2], %s630_s25 }
  0x16   : > { %s128_s30 = sshll.u32 %s121_s29, 4  ;;  %p975_p13 = pnand %p707_p10, %p944_p5  ;;  %s979_s30 = int_to_ptr.vmem [resolvable:$true] %s128_s30 }
  0x17   : > { %s118_s4 = scalar_lea.sflag [#allocation3], %s964_s23  ;;  %s750_s5 = scalar_lea.hbm %s971_s28, 128 }
  0x18   : > { %p751_p2 = scmp.ne.s32.totalorder %s971_s28, %s750_s5  ;;  %p752_p3 = pneg %p975_p13 }
  0x19   : > { %s755_s8 = scalar_lea.hbm %s1140_s0, 256  ;;  %p756_p5 = scmp.lt.u32.totalorder %s971_s28, %s1140_s0 }
  0x1a   : > { %p753_p4 = pnand %p752_p3, %p751_p2  ;;  %p757_p8 = scmp.lt.u32.totalorder %s755_s8, %s750_s5 }
  0x1b   : > { %p759_p9 = scmp.lt.u32.totalorder %s750_s5, %s971_s28 }
  0x1c   : > { %p754_p7 = pneg %p753_p4  ;;  %p758_p10 = por %p757_p8, %p756_p5 }
  0x1e   : > { %p760_p0 = por %p759_p9, %p758_p10 }
  0x20   : > { %p761_p1 = pnand %p760_p0, %p754_p7 }
  0x22   : > { %764 = shalt.err (!%p761_p1)
}
  0x23   : > { %s765_s17 = scalar_lea.vmem %s979_s30, 128  ;;  %s882_s19 = smov [#allocation2]  }
  0x24   : > { %p766_p2 = scmp.ne.s32.totalorder %s979_s30, %s765_s17  ;;  %s770_s24 = sshll.u32 %s882_s19, 4  ;;  %s771_s24 = int_to_ptr.vmem [resolvable:$false] %s770_s24 }
  0x25   : > { %s772_s25 = scalar_lea.vmem %s771_s24, 256  ;;  %p773_p11 = scmp.lt.s32.totalorder %s979_s30, %s771_s24 }
  0x26   : > { %p768_p4 = pnand %p766_p2, %p752_p3  ;;  %p774_p5 = scmp.lt.s32.totalorder %s772_s25, %s765_s17 }
  0x28   : > { %p769_p12 = pneg %p768_p4  ;;  %p775_p8 = por %p774_p5, %p773_p11 }
  0x2a   : > { %p776_p9 = pnand %p775_p8, %p769_p12 }
  0x2c   : > { %779 = shalt.err (!%p776_p9)
}
  0x2d   : > { %699 = dma.hbm_to_vmem [thread:$0]  (!%p975_p13), %s971_s28, 128, %s979_s30, %s118_s4  }
  0x2e   : > { %p1150_p0 = scmp.lt.s32.totalorder %s880_s12, 3  ;;  %p1151_p1 = scmp.ge.s32.totalorder %s880_s12, 1 }
  0x2f   : > { %s687_s27 = smul.u32 96, %s964_s23  ;;  %s136_s28 = scalar_lea.sflag [#allocation6], %s964_s23 }
  0x30   : > { %p1013_p7 = pnand %p1151_p1, %p1150_p0  ;;  %s688_s29 = smul.u32 1536, %s880_s12 }
  0x31   : > { %s139_s8 = scalar_lea.vmem [#allocation5], %s687_s27  ;;  %s785_s17 = scalar_lea.hbm %s1141_s1, 3072 }
  0x32   : > { %s1022_s7 = scalar_lea.hbm %s1141_s1, %s688_s29  ;;  %s146_s14 = sshll.u32 %s139_s8, 4  ;;  %s1024_s14 = int_to_ptr.vmem [resolvable:$true] %s146_s14 }
  0x33   : > { %s780_s30 = scalar_lea.hbm %s1022_s7, 1536  ;;  %p786_p2 = scmp.lt.u32.totalorder %s1022_s7, %s1141_s1 }
  0x34   : > { %p781_p11 = scmp.ne.s32.totalorder %s1022_s7, %s780_s30  ;;  %p787_p4 = scmp.lt.u32.totalorder %s785_s17, %s780_s30 }
  0x35   : > { %p789_p8 = scmp.lt.u32.totalorder %s780_s30, %s1022_s7 }
  0x36   : > { %p783_p12 = pnand %p781_p11, %p752_p3  ;;  %p788_p5 = por %p787_p4, %p786_p2 }
  0x38   : > { %p784_p10 = pneg %p783_p12  ;;  %p790_p9 = por %p789_p8, %p788_p5 }
  0x3a   : > { %p791_p0 = pnand %p790_p9, %p784_p10 }
  0x3c   : > { %794 = shalt.err (!%p791_p0)
}
  0x3d   : > { %s795_s25 = scalar_lea.vmem %s1024_s14, 1536  ;;  %s883_s27 = smov [#allocation5]  }
  0x3e   : > { %p796_p1 = scmp.ne.s32.totalorder %s1024_s14, %s795_s25  ;;  %s800_s29 = sshll.u32 %s883_s27, 4  ;;  %s801_s29 = int_to_ptr.vmem [resolvable:$false] %s800_s29 }
  0x3f   : > { %s802_s5 = scalar_lea.vmem %s801_s29, 3072  ;;  %p803_p6 = scmp.lt.s32.totalorder %s1024_s14, %s801_s29 }
  0x40   : > { %p798_p11 = pnand %p796_p1, %p752_p3  ;;  %p804_p2 = scmp.lt.s32.totalorder %s802_s5, %s795_s25 }
  0x42   : > { %p799_p12 = pneg %p798_p11  ;;  %p805_p4 = por %p804_p2, %p803_p6 }
  0x44   : > { %p806_p5 = pnand %p805_p4, %p799_p12 }
  0x46   : > { %809 = shalt.err (!%p806_p5)
}
  0x47   : > { %s884_s6 = smov 384   ;;  %s885_s8 = smov 24  }
  0x48   : > { %702 = dma.hbm_to_vmem [thread:$0]  (!%p975_p13), %s1022_s7, 1536, %s1024_s14, %s136_s28, %s884_s6, %s884_s6, %s885_s8  }
  0x49   : > { %158 = sbr.rel (%p1013_p7) target bundleno = 911 (0x38f), region = 28  ;;  %s1055_s30 = sand.u32 (!%p1013_p7), 1, %s872_s10  }
  0x4a   : > { %s634_s4 = sshll.u32 (!%p1013_p7), %s1055_s30, 3  ;;  %s161_s16 = scalar_lea.sflag (!%p1013_p7), [#allocation3], %s1055_s30 }
  0x4b   : > { %s164_s17 = scalar_lea.vmem (!%p1013_p7), [#allocation2], %s634_s4  ;;  %p1153_p6 = scmp.ne.s32.totalorder (!%p1013_p7), %s1146_s20, 0 }
  0x50   : > { %855 = dma.done.wait (%p1153_p6), %s161_s16, 128  }
  0x51   : > { %857 = vsyncadd (%p1153_p6), %s161_s16, 4294967168  ;;  %s689_s23 = smul.u32 96, %s1055_s30  ;;  %s170_s3 = scalar_lea.sflag [#allocation6], %s1055_s30 }
  0x53   : > { %s1067_s26 = scalar_lea.vmem [#allocation5], %s689_s23 }
  0x54   : > { %859 = dma.done.wait (%p1153_p6), %s170_s3, 1536  }
  0x55   : > { %861 = vsyncadd (%p1153_p6), %s170_s3, 4294965760  ;;  %v886_v0 = vmov 0.0   ;;  %v201_v1 = vld [vmem:[%s1067_s26 + $0x8] sm:$0xff]  ;;  %v204_v2 = vld [vmem:[%s1067_s26 + $0x20] sm:$0xff]  ;;  %vm212_vm0 = vcmask 261120   ;;  %vm887_vm1 = vmmov 0   ;;  %v428_v24 = vlaneseq }
  0x56   : > { %280 = vmatprep.mubr.f32.mxu0 %v886_v0  ;;  %v200_v3 = vld [vmem:[%s1067_s26] sm:$0xff]  ;;  %v673_v4 = vpack.c.bf16 %v204_v2, %v201_v1  ;;  %v203_v5 = vld [vmem:[%s1067_s26 + $0x18] sm:$0xff]  ;;  %v210_v7 = vld [vmem:[%s1067_s26 + $0x50] sm:$0xff]  ;;  %660 = vmatprep.mubr.msk.f32.mxu1 %vm887_vm1, %v886_v0  ;;  %v888_v17 = vmov 0.0|0.0   ;;  %vm434_vm3 = vcmask 64512   ;;  %s640_s20 = sshll.u32 %s926_s13, 7 }
  0x57   : > { %v207_v6 = vld [vmem:[%s1067_s26 + $0x38] sm:$0xff]  ;;  %v675_v8 = vpack.c.bf16 %v203_v5, %v200_v3  ;;  %v206_v10 = vld [vmem:[%s1067_s26 + $0x30] sm:$0xff]  ;;  %v209_v11 = vld [vmem:[%s1067_s26 + $0x48] sm:$0xff]  ;;  %681 = vmatprep.subr.bf16.mxu1 %v888_v17  ;;  %v429_v25 = vshrl.u32 %v428_v24, 7  ;;  %v431_v26 = vand.u32 127, %v428_v24  ;;  %s198_s7 = scalar_lea.vmem [#allocation7], %s634_s4  ;;  %s1096_s24 = scalar_lea.hbm %s1142_s2, %s640_s20 }
  0x58   : > { %v677_v9 = vpack.c.bf16 %v210_v7, %v207_v6  ;;  %674 = vmatprep.subr.bf16.mxu0 %v673_v4  ;;  %v679_v12 = vpack.c.bf16 %v209_v11, %v206_v10  ;;  %v199_v13 = vld [vmem:[%s164_s17] sm:$0xff]  ;;  %v205_v15 = vld [vmem:[%s1067_s26 + $0x28] sm:$0xff]  ;;  %v208_v16 = vld [vmem:[%s1067_s26 + $0x40] sm:$0xff]  ;;  %s534_s14 = sshll.u32 %s198_s7, 4  ;;  %s521_s25 = scalar_lea.sflag [#allocation4], %s1055_s30  ;;  %s1098_s14 = int_to_ptr.vmem [resolvable:$true] %s534_s14 }
  0x59   : > { %676 = vmatpush1.bf16.msra.mxu0 %v675_v8  ;;  %v202_v14 = vld [vmem:[%s1067_s26 + $0x10] sm:$0xff]  ;;  %v211_v19 = vld [vmem:[%s1067_s26 + $0x58] sm:$0xff]  ;;  %vm432_vm2 = vcmp.ge.s32.totalorder %v431_v26, %v429_v25  ;;  %s810_s13 = scalar_lea.vmem %s1098_s14, 128  ;;  %p1154_p3 = scmp.ne.s32.totalorder %s1147_s21, 0 }
  0x5a   : > { %678 = vmatprep.subr.bf16.mxu0 %v677_v9  ;;  %v682_v18 = vpack.c.bf16 %v205_v15, %v202_v14  ;;  %v685_v20 = vpack.c.bf16 %v211_v19, %v208_v16  ;;  %p811_p13 = scmp.ne.s32.totalorder %s1098_s14, %s810_s13  ;;  %s889_s27 = smov [#allocation7]  }
  0x5b   : > { %s814_s29 = sshll.u32 %s889_s27, 4  ;;  %s815_s29 = int_to_ptr.vmem [resolvable:$false] %s814_s29 }
  0x5c   : > { %683 = vmatpush3.bf16.msra.mxu1 %v682_v18  ;;  %p812_p7 = pnand %p811_p13, %p1154_p3  ;;  %s816_s5 = scalar_lea.vmem %s815_s29, 256 }
  0x5d   : > { %680 = vmatpush1.bf16.msra.mxu0 %v679_v12  ;;  %684 = vmatprep.subr.bf16.mxu1 %v888_v17  ;;  %p817_p8 = scmp.lt.s32.totalorder %s1098_s14, %s815_s29  ;;  %p818_p9 = scmp.lt.s32.totalorder %s816_s5, %s810_s13 }
  0x5e   : > { %663 = vmatprep.subr.mxu0 %v886_v0  ;;  %p813_p10 = pneg %p812_p7 }
  0x5f   : > { %p819_p0 = por %p818_p9, %p817_p8 }
  0x60   : > { %636 = vmatmul.mubr.msk.f32.vlgmr.msra.gmra.mrb[0].mxu0 %vm212_vm0, %v199_v13  ;;  %686 = vmatpush3.bf16.msra.mxu1 %v685_v20 }
  0x61   : > { %665 = vmatprep.mubr.msk.f32.mxu0 %vm887_vm1, %v886_v0  ;;  %668 = vmatprep.subr.mxu1 %v886_v0  ;;  %p820_p1 = pnand %p819_p0, %p813_p10 }
  0x63   : > { %661 = vmatmul.mubr.msk.f32.vlgmr.msra.gmra.mrb[0].mxu1 %vm212_vm0, %v199_v13 }
  0x64   : > { %670 = vmatprep.mubr.msk.f32.mxu1 %vm887_vm1, %v886_v0 }
 0x133   : > { %v282_v21 = vpop.f32.mrb[0].mxu0 }
 0x134   : > { %v284_v22 = vpop.f32.mrb[1].mxu0  ;;  %v357_v23 = vmul.f32 0.25, %v282_v21 }
 0x135   : > { %664 = vmatpush3.xpose.msra.mxu0 %v284_v22 }
 0x136   : > { %v353_v31 = vpop.f32.mrb[0].mxu1 }
 0x137   : > { %v662_v32 = vpop.f32.mrb[1].mxu1  ;;  %669 = vmatpush3.msra.mxu1 %v353_v31 }
 0x138   : > { %666 = vmatmul.mubr.f32.vlgmr.msra.gmra.mrb[2].mxu0 %v357_v23 }
 0x20b   : > { %v424_v27 = vpop.f32.mrb[2].mxu0 }
 0x20c   : > { %v433_v28 = vsel %vm432_vm2, -inf, %v424_v27  ;;  %v667_v29 = vpop.f32.mrb[3].mxu0 }
 0x20d   : > { %v435_v30 = vsel %vm434_vm3, %v433_v28, -inf }
 0x20e   : > { %436 = vmax.xlane.f32.xlu0 %v435_v30 }
 0x29b   : > { %v437_v33 = vpop.xlane.xlu0 %436 }
 0x29c   : > { %v438_v34 = vsub.f32 %v433_v28, %v437_v33 }
 0x29e   : > { %v439_v35 = vmul.f32 1.442695, %v438_v34 }
 0x2a0   : > { %746 = vpow2.f32 %v439_v35 }
 0x2aa   : > { %v747_v36 = vpop.eup %746 }
 0x2ab   : > { %671 = vmatmul.mubr.msk.f32.vlgmr.msra.gmra.mrb[2].mxu1 %vm434_vm3, %v747_v36  ;;  %v441_v37 = vsel %vm434_vm3, %v747_v36, 0.0 }
 0x2ac   : > { %442 = vadd.xlane.f32.xlu0 %v441_v37 }
 0x339   : > { %v443_v38 = vpop.xlane.xlu0 %442 }
 0x33a   : > { %748 = vrcp.f32 %v443_v38 }
 0x344   : > { %v749_v39 = vpop.eup %748 }
 0x37e   : > { %v513_v40 = vpop.f32.mrb[2].mxu1 }
 0x37f   : > { %v518_v41 = vmul.f32 %v749_v39, %v513_v40  ;;  %v672_v42 = vpop.f32.mrb[3].mxu1 }
 0x381   : > { %519 = vst [vmem:[%s198_s7] sm:$0xff] %v518_v41 }
 0x382   : > { %823 = shalt.err (!%p820_p1)
}
 0x383   : > { %s824_s6 = scalar_lea.hbm %s1096_s24, 128  ;;  %s828_s4 = scalar_lea.hbm %s1142_s2, 256 }
 0x384   : > { %p825_p11 = scmp.ne.s32.totalorder %s1096_s24, %s824_s6  ;;  %p829_p4 = scmp.lt.u32.totalorder %s1096_s24, %s1142_s2 }
 0x385   : > { %p830_p5 = scmp.lt.u32.totalorder %s828_s4, %s824_s6  ;;  %p832_p13 = scmp.lt.u32.totalorder %s824_s6, %s1096_s24 }
 0x386   : > { %p826_p12 = pnand %p825_p11, %p1154_p3 }
 0x387   : > { %p831_p6 = por %p830_p5, %p829_p4 }
 0x388   : > { %p827_p2 = pneg %p826_p12 }
 0x389   : > { %p833_p7 = por %p832_p13, %p831_p6 }
 0x38b   : > { %p834_p10 = pnand %p833_p7, %p827_p2 }
 0x38d   : > { %837 = shalt.err (!%p834_p10)
}
 0x38e   : > { %694 = dma.vmem_to_hbm [thread:$0]  (%p1154_p3), %s1098_s14, 128, %s1096_s24, %s521_s25  }
 0x38f PF: > { %s546_s23 = sand.u32 1, %s868_s9   ;;  %p1155_p8 = scmp.ne.s32.totalorder %s1148_s22, 0 }
 0x390   : > { %p1156_p9 = scmp.ge.s32.totalorder %s880_s12, 2  ;;  %s547_s3 = scalar_lea.sflag [#allocation4], %s546_s23 }
 0x392   : > { %p704_p0 = pnand %p1156_p9, %p1155_p8 }
 0x394   : > { %863 = dma.done.wait (!%p704_p0), %s547_s3, 128  }
 0x395   : > { %865 = vsyncadd (!%p704_p0), %s547_s3, 4294967168  ;;  %p18_p1 = scmp.ge.s32.totalorder %s930_s15, 4   ;;  %s1157_s9 = smov %s872_s10 }
 0x396   : > { %s1158_s10 = smov %s876_s11  ;;  %s1159_s11 = smov %s942_s18 }
 0x397   : > { %s1160_s12 = smov %s930_s15  ;;  %20 = sbr.rel (!%p18_p1) target bundleno = 7 (0x7), region = 86 }
 0x39e   :  { %552 = vsyncpa [#allocation3], 1 }
 0x39f   :  { %554 = vsyncpa [#allocation3 + $0x1], 1 }
 0x3a0   :  { %555 = vsyncpa [#allocation6], 1 }
 0x3a1   :  { %557 = vsyncpa [#allocation6 + $0x1], 1 }
 0x3a2   :  { %558 = vsyncpa [#allocation4], 1 }
 0x3a3   :  { %560 = vsyncpa [#allocation4 + $0x1], 1 }

</bundles_post_ra>
